<compile_context>
chip_gen: v7x
topology: tpu7x:2x2x1
jax: 0.10.0
libtpu: 0.0.40
codegen_flags: <defaults>
</compile_context>

<pallas_src>
from typing import NamedTuple

import jax
import jax.numpy as jnp
from jax.experimental import pallas as pl
from jax.experimental.pallas import tpu as pltpu

LANE = 128
NEG_FILL = -1e30  # bias fill for padded output-logit columns -> softmax prob 0


def _round_up(x, m):
    return ((x + m - 1) // m) * m


def _pick_block_b(b_padded):
    """Batch tile: >=2 grid steps when possible (v7x megacore), <=1024 rows per
    step (v5e/v6e HBM-roofline sweet spot), multiple of 8, dividing the padded
    batch."""
    if b_padded <= 8:
        return 8
    upper = max(8, min(1024, (b_padded // 2) // 8 * 8))
    for bm in range(upper, 7, -8):
        if b_padded % bm == 0:
            return bm
    return 8  # b_padded is a multiple of 8, so 8 always divides


class PreparedRewardParams(NamedTuple):
    weights: tuple       # bf16, lane-padded, each (in_p, out_p)
    biases: tuple        # f32, each (1, out_p); padded logit cols get NEG_FILL
    num_states: int
    num_actions: int


def prepare_reward_network_params(params):
    """One-time prep: pad every Linear layer to lane-dense (multiple-of-128)
    dims and cast weights to bf16.  Call once and reuse for every forward."""
    n_layers = len(params)
    num_states = params[0][0].shape[0]
    num_actions = params[-1][0].shape[1]

    weights, biases = [], []
    prev_p = max(_round_up(num_states, LANE), LANE)  # padded input features
    for li, (w, b) in enumerate(params):
        fi, fo = w.shape
        fo_p = max(_round_up(fo, LANE), LANE)
        w_p = jnp.zeros((prev_p, fo_p), jnp.bfloat16).at[:fi, :fo].set(
            w.astype(jnp.bfloat16))
        # Hidden padded cols: zero weight + zero bias -> activation 0.
        # Final padded cols: zero weight + NEG_FILL bias -> softmax prob 0.
        fill = 0.0 if li < n_layers - 1 else NEG_FILL
        b_p = jnp.full((1, fo_p), fill, jnp.float32).at[:, :fo].set(
            b.astype(jnp.float32).reshape(1, fo))
        weights.append(w_p)
        biases.append(b_p)
        prev_p = fo_p
    return PreparedRewardParams(tuple(weights), tuple(biases),
                                num_states, num_actions)


def _make_mlp_softmax_kernel(n_layers):
    """Kernel body: refs = (x, w0, b0, w1, b1, ..., out)."""

    def kernel(*refs):
        x_ref = refs[0]
        o_ref = refs[-1]
        params = refs[1:-1]

        h_bf = x_ref[...]  # bf16 activations (bm, in_p)
        logits = None
        for i in range(n_layers):
            w = params[2 * i][...]          # bf16 (in_p, out_p)
            b = params[2 * i + 1][...]      # f32  (1, out_p)
            # bf16 MXU operands, f32 accumulation.
            h32 = jnp.dot(h_bf, w, preferred_element_type=jnp.float32) + b
            if i < n_layers - 1:
                h32 = jnp.maximum(h32, 0.0)            # ReLU in f32 (VPU)
                h_bf = h32.astype(jnp.bfloat16)        # bf16 for next MXU op
            else:
                logits = h32                           # f32 logits (bm, out_p)

        # softmax(dim=-1), numerically stable.  Padded columns carry NEG_FILL
        # bias -> exp underflows to exactly 0, denominator unaffected.
        m = jnp.max(logits, axis=-1, keepdims=True)
        e = jnp.exp(logits - m)
        # Exact normalization: pl.reciprocal(approx=True) made row sums drift
        # by the approximation error; the exact divide is free here.
        probs = e / jnp.sum(e, axis=-1, keepdims=True)
        o_ref[...] = probs.astype(o_ref.dtype)

    return kernel


def reward_network_forward(x, prepped, *, block_b=None, out_dtype=jnp.float32):
    """x: (B, num_states) f32; prepped: PreparedRewardParams.

    Returns softmax probabilities of shape (B, num_actions) in `out_dtype`
    (use jnp.bfloat16 to halve the HBM writeback on v5e/v6e at large B)."""
    B, ns = x.shape
    assert ns == prepped.num_states
    n_layers = len(prepped.weights)
    in_p = prepped.weights[0].shape[0]
    out_p = prepped.weights[-1].shape[1]

    # Batch tile selection + ragged handling (pad rows with zeros, slice off).
    b8 = _round_up(max(B, 8), 8)
    bm = block_b if block_b is not None else _pick_block_b(b8)
    assert bm % 8 == 0, "batch tile must be a multiple of 8"
    b_p = _round_up(b8, bm)

    # Lane-dense bf16 input slab: pad batch rows and feature lanes with zeros.
    x_p = jnp.zeros((b_p, in_p), jnp.bfloat16).at[:B, :ns].set(
        x.astype(jnp.bfloat16))

    in_specs = [pl.BlockSpec((bm, in_p), lambda i: (i, 0))]
    flat_params = []
    for w_p, bias_p in zip(prepped.weights, prepped.biases):
        flat_params.extend([w_p, bias_p])
        # Constant index maps: weights/biases stay VMEM-resident across tiles.
        in_specs.append(pl.BlockSpec(w_p.shape, lambda i: (0, 0)))
        in_specs.append(pl.BlockSpec(bias_p.shape, lambda i: (0, 0)))

    out_padded = pl.pallas_call(
        _make_mlp_softmax_kernel(n_layers),
        out_shape=jax.ShapeDtypeStruct((b_p, out_p), out_dtype),
        grid=(b_p // bm,),
        in_specs=in_specs,
        out_specs=pl.BlockSpec((bm, out_p), lambda i: (i, 0)),
        compiler_params=pltpu.CompilerParams(
            dimension_semantics=("parallel",)),
    )(x_p, *flat_params)

    return out_padded[:B, :prepped.num_actions]


def _reference_forward(x, params):
    """Pure-JAX reference mirroring the kernel's precision (bf16 MXU, f32 acc)."""
    h = x.astype(jnp.bfloat16)
    h32 = None
    for i, (w, b) in enumerate(params):
        h32 = jnp.dot(h, w.astype(jnp.bfloat16),
                      preferred_element_type=jnp.float32) + b.astype(jnp.float32)
        if i < len(params) - 1:
            h = jnp.maximum(h32, 0.0).astype(jnp.bfloat16)
    return jax.nn.softmax(h32, axis=-1)


def _init_params(key, dims):
    """Deterministic init for Linear layers: dims = [in, hidden..., out]."""
    params = []
    for i in range(len(dims) - 1):
        key, kw = jax.random.split(key)
        fan_in, fan_out = dims[i], dims[i + 1]
        w = jax.random.normal(kw, (fan_in, fan_out), jnp.float32) * (1.0 / fan_in**0.5)
        b = jnp.zeros((1, fan_out), jnp.float32)
        params.append((w, b))
    return params


if __name__ == "__main__":
    # Small shapes consistent with the module: MLP([num_states] + layers + [num_actions])
    batch = 64
    num_states = 32
    layers = [64, 64]
    num_actions = 8

    key = jax.random.PRNGKey(0)
    key, kx = jax.random.split(key)
    x = jax.random.normal(kx, (batch, num_states), jnp.float32)

    params = _init_params(key, [num_states] + layers + [num_actions])

    # One-time parameter prep (padding + bf16 cast), reused for every call.
    prepped = prepare_reward_network_params(params)

    out = reward_network_forward(x, prepped)   # B=64 -> bm=32, 2 grid steps
    out = jax.block_until_ready(out)

    ref = _reference_forward(x, params)
    assert out.shape == (batch, num_actions)
    # bf16 MXU operands -> ~1e-3-level elementwise tolerance vs f32 reference.
    assert jnp.allclose(out, ref, atol=2e-3, rtol=2e-3)
    # Exact softmax normalization -> rows sum to 1 within f32 rounding.
    assert jnp.allclose(jnp.sum(out, axis=-1), 1.0, atol=1e-3)

    print("KERNEL_OK")
</pallas_src>

<mosaic_0001>
module attributes {stable_mosaic.version = 11 : i64} {
  func.func @kernel(%arg0: i32, %arg1: memref<32x128xbf16, #tpu.memory_space<vmem>>, %arg2: memref<128x128xbf16, #tpu.memory_space<vmem>>, %arg3: memref<1x128xf32, #tpu.memory_space<vmem>>, %arg4: memref<128x128xbf16, #tpu.memory_space<vmem>>, %arg5: memref<1x128xf32, #tpu.memory_space<vmem>>, %arg6: memref<128x128xbf16, #tpu.memory_space<vmem>>, %arg7: memref<1x128xf32, #tpu.memory_space<vmem>>, %arg8: memref<32x128xf32, #tpu.memory_space<vmem>>) attributes {dimension_semantics = [#tpu.dimension_semantics<parallel>], iteration_bounds = array<i64: 2>, scalar_prefetch = 0 : i64, scratch_operands = 0 : i64, tpu.core_type = #tpu.core_type<tc>, window_params = [{transform_indices = @transform_0, window_bounds = array<i64: 32, 128>}, {pipeline_mode = #tpu.pipeline_mode<synchronous>, transform_indices = @transform_1, window_bounds = array<i64: 128, 128>}, {pipeline_mode = #tpu.pipeline_mode<synchronous>, transform_indices = @transform_2, window_bounds = array<i64: 1, 128>}, {pipeline_mode = #tpu.pipeline_mode<synchronous>, transform_indices = @transform_3, window_bounds = array<i64: 128, 128>}, {pipeline_mode = #tpu.pipeline_mode<synchronous>, transform_indices = @transform_4, window_bounds = array<i64: 1, 128>}, {pipeline_mode = #tpu.pipeline_mode<synchronous>, transform_indices = @transform_5, window_bounds = array<i64: 128, 128>}, {pipeline_mode = #tpu.pipeline_mode<synchronous>, transform_indices = @transform_6, window_bounds = array<i64: 1, 128>}, {transform_indices = @transform_7, window_bounds = array<i64: 32, 128>}]} {
    %c0 = arith.constant 0 : index
    %c0_0 = arith.constant 0 : index
    %0 = vector.load %arg1[%c0, %c0_0] : memref<32x128xbf16, #tpu.memory_space<vmem>>, vector<32x128xbf16>
    %c0_1 = arith.constant 0 : index
    %c0_2 = arith.constant 0 : index
    %1 = vector.load %arg2[%c0_1, %c0_2] : memref<128x128xbf16, #tpu.memory_space<vmem>>, vector<128x128xbf16>
    %c0_3 = arith.constant 0 : index
    %c0_4 = arith.constant 0 : index
    %2 = vector.load %arg3[%c0_3, %c0_4] : memref<1x128xf32, #tpu.memory_space<vmem>>, vector<1x128xf32>
    %cst = arith.constant dense<0.000000e+00> : vector<32x128xf32>
    %3 = tpu.matmul %0, %1, %cst {dimension_numbers = #tpu.dot_dimension_numbers<[1], [0], [0], [1], [0, 0, 1, 1], [], []>} : vector<32x128xbf16>, vector<128x128xbf16>, vector<32x128xf32> -> vector<32x128xf32>
    %4 = vector.broadcast %2 : vector<1x128xf32> to vector<32x128xf32>
    %5 = arith.addf %3, %4 : vector<32x128xf32>
    %cst_5 = arith.constant 0.000000e+00 : f32
    %6 = vector.broadcast %cst_5 : f32 to vector<32x128xf32>
    %7 = arith.maximumf %5, %6 : vector<32x128xf32>
    %8 = arith.truncf %7 : vector<32x128xf32> to vector<32x128xbf16>
    %c0_6 = arith.constant 0 : index
    %c0_7 = arith.constant 0 : index
    %9 = vector.load %arg4[%c0_6, %c0_7] : memref<128x128xbf16, #tpu.memory_space<vmem>>, vector<128x128xbf16>
    %c0_8 = arith.constant 0 : index
    %c0_9 = arith.constant 0 : index
    %10 = vector.load %arg5[%c0_8, %c0_9] : memref<1x128xf32, #tpu.memory_space<vmem>>, vector<1x128xf32>
    %cst_10 = arith.constant dense<0.000000e+00> : vector<32x128xf32>
    %11 = tpu.matmul %8, %9, %cst_10 {dimension_numbers = #tpu.dot_dimension_numbers<[1], [0], [0], [1], [0, 0, 1, 1], [], []>} : vector<32x128xbf16>, vector<128x128xbf16>, vector<32x128xf32> -> vector<32x128xf32>
    %12 = vector.broadcast %10 : vector<1x128xf32> to vector<32x128xf32>
    %13 = arith.addf %11, %12 : vector<32x128xf32>
    %cst_11 = arith.constant 0.000000e+00 : f32
    %14 = vector.broadcast %cst_11 : f32 to vector<32x128xf32>
    %15 = arith.maximumf %13, %14 : vector<32x128xf32>
    %16 = arith.truncf %15 : vector<32x128xf32> to vector<32x128xbf16>
    %c0_12 = arith.constant 0 : index
    %c0_13 = arith.constant 0 : index
    %17 = vector.load %arg6[%c0_12, %c0_13] : memref<128x128xbf16, #tpu.memory_space<vmem>>, vector<128x128xbf16>
    %c0_14 = arith.constant 0 : index
    %c0_15 = arith.constant 0 : index
    %18 = vector.load %arg7[%c0_14, %c0_15] : memref<1x128xf32, #tpu.memory_space<vmem>>, vector<1x128xf32>
    %cst_16 = arith.constant dense<0.000000e+00> : vector<32x128xf32>
    %19 = tpu.matmul %16, %17, %cst_16 {dimension_numbers = #tpu.dot_dimension_numbers<[1], [0], [0], [1], [0, 0, 1, 1], [], []>} : vector<32x128xbf16>, vector<128x128xbf16>, vector<32x128xf32> -> vector<32x128xf32>
    %20 = vector.broadcast %18 : vector<1x128xf32> to vector<32x128xf32>
    %21 = arith.addf %19, %20 : vector<32x128xf32>
    %cst_17 = arith.constant dense<0xFF800000> : vector<32xf32>
    %22 = vector.multi_reduction <maximumf>, %21, %cst_17 [1] : vector<32x128xf32> to vector<32xf32>
    %23 = vector.shape_cast %22 : vector<32xf32> to vector<32x1xf32>
    %24 = vector.broadcast %23 : vector<32x1xf32> to vector<32x128xf32>
    %25 = arith.subf %21, %24 : vector<32x128xf32>
    %26 = math.exp %25 : vector<32x128xf32>
    %cst_18 = arith.constant dense<0.000000e+00> : vector<32xf32>
    %27 = vector.multi_reduction <add>, %26, %cst_18 [1] : vector<32x128xf32> to vector<32xf32>
    %28 = vector.shape_cast %27 : vector<32xf32> to vector<32x1xf32>
    %29 = vector.broadcast %28 : vector<32x1xf32> to vector<32x128xf32>
    %30 = arith.divf %26, %29 : vector<32x128xf32>
    %c0_19 = arith.constant 0 : index
    %c0_20 = arith.constant 0 : index
    %31 = vector.load %arg8[%c0_19, %c0_20] : memref<32x128xf32, #tpu.memory_space<vmem>>, vector<32x128xf32>
    tpu.vector_store %arg8[%c0_19, %c0_20], %30 {strides = array<i32>} : memref<32x128xf32, #tpu.memory_space<vmem>>, vector<32x128xf32>,
    return
  }
  func.func @transform_0(%arg0: i32) -> (i32, i32) {
    %c0_i32 = arith.constant 0 : i32
    %c0_i32_0 = arith.constant 0 : i32
    return %arg0, %c0_i32 : i32, i32
  }
  func.func @transform_1(%arg0: i32) -> (i32, i32) {
    %c0_i32 = arith.constant 0 : i32
    %c0_i32_0 = arith.constant 0 : i32
    %c0_i32_1 = arith.constant 0 : i32
    return %c0_i32, %c0_i32_0 : i32, i32
  }
  func.func @transform_2(%arg0: i32) -> (i32, i32) {
    %c0_i32 = arith.constant 0 : i32
    %c0_i32_0 = arith.constant 0 : i32
    %c0_i32_1 = arith.constant 0 : i32
    return %c0_i32, %c0_i32_0 : i32, i32
  }
  func.func @transform_3(%arg0: i32) -> (i32, i32) {
    %c0_i32 = arith.constant 0 : i32
    %c0_i32_0 = arith.constant 0 : i32
    %c0_i32_1 = arith.constant 0 : i32
    return %c0_i32, %c0_i32_0 : i32, i32
  }
  func.func @transform_4(%arg0: i32) -> (i32, i32) {
    %c0_i32 = arith.constant 0 : i32
    %c0_i32_0 = arith.constant 0 : i32
    %c0_i32_1 = arith.constant 0 : i32
    return %c0_i32, %c0_i32_0 : i32, i32
  }
  func.func @transform_5(%arg0: i32) -> (i32, i32) {
    %c0_i32 = arith.constant 0 : i32
    %c0_i32_0 = arith.constant 0 : i32
    %c0_i32_1 = arith.constant 0 : i32
    return %c0_i32, %c0_i32_0 : i32, i32
  }
  func.func @transform_6(%arg0: i32) -> (i32, i32) {
    %c0_i32 = arith.constant 0 : i32
    %c0_i32_0 = arith.constant 0 : i32
    %c0_i32_1 = arith.constant 0 : i32
    return %c0_i32, %c0_i32_0 : i32, i32
  }
  func.func @transform_7(%arg0: i32) -> (i32, i32) {
    %c0_i32 = arith.constant 0 : i32
    %c0_i32_0 = arith.constant 0 : i32
    return %arg0, %c0_i32 : i32, i32
  }
}

</mosaic_0001>

<bundles_post_ra>
// kernel: tpu_custom_call.1
= control target key start
LH: loop header
LB: loop body
LE: loop exit
PB: predicated region body
PF: predicated region fallthrough
CT: control target
= control target key end

     0   :  { %12 = vsyncpa [#allocation3], 0  ;;  %s1676_s0 = inlined_call_operand.hbm [shape: bf16[64,128], index: 0, kind: input, shape index: {}]   ;;  %s1677_s1 = inlined_call_operand.hbm [shape: bf16[128,128], index: 1, kind: input, shape index: {}]   ;;  %s1678_s2 = inlined_call_operand.vmem [shape: f32[1,128], index: 2, kind: input, shape index: {}]   ;;  %s1679_s3 = inlined_call_operand.hbm [shape: bf16[128,128], index: 3, kind: input, shape index: {}]   ;;  %s1680_s4 = inlined_call_operand.vmem [shape: f32[1,128], index: 4, kind: input, shape index: {}]   ;;  %s1681_s5 = inlined_call_operand.hbm [shape: bf16[128,128], index: 5, kind: input, shape index: {}]   ;;  %s1682_s6 = inlined_call_operand.vmem [shape: f32[1,128], index: 6, kind: input, shape index: {}]   ;;  %s1683_s7 = inlined_call_operand.hbm [shape: f32[64,128], index: 7, kind: output, shape index: {}]  }
   0x1   :  { %14 = vsyncpa [#allocation3 + $0x1], 0 }
   0x2   :  { %15 = vsyncpa [#allocation6], 0 }
   0x3   :  { %16 = vsyncpa [#allocation9], 0 }
   0x4   :  { %17 = vsyncpa [#allocation4], 0 }
   0x5   :  { %19 = vsyncpa [#allocation4 + $0x1], 0  ;;  %s1391_s24 = smov 0   ;;  %s1393_s25 = smov 0  }
   0x6   :  { %s1395_s26 = smov 0   ;;  %s1397_s27 = smov 0  }
   0x7 LB: > { %s1412_s28 = sadd.s32 4294967295, %s1340_s27   ;;  %s888_s29 = sadd.s32 4294967294, %s1340_s27   ;;  %s1340_s27 = sphi %s1397_s27, %s1709_s27   ;;  %s1336_s26 = sphi %s1395_s26, %s1708_s26   ;;  %s1332_s25 = sphi %s1393_s25, %s1707_s25   ;;  %s1328_s24 = sphi %s1391_s24, %s1706_s24  }
   0x8   : > { %p45_p0 = scmp.ne.s32.totalorder %s1332_s25, %s1328_s24  ;;  %p1684_p1 = scmp.eq.s32.totalorder %s1412_s28, 0 }
   0x9   : > { %p201_p3 = scmp.eq.s32.totalorder %s888_s29, 1  ;;  %p889_p5 = scmp.ge.s32.totalorder %s1340_s27, 1 }
   0xa   : > { %p1421_p4 = por %p1684_p1, %p45_p0  ;;  %p208_p7 = scmp.lt.s32.totalorder %s1340_s27, 3 }
   0xb   : > { %p1426_p6 = por %p201_p3, %p45_p0  ;;  %s1342_s10 = smov [#allocation5]  }
   0xc   : > { %s1688_s30 = scalar_select %p1421_p4, 1, 0 }
   0xd   : > { %s1689_s8 = scalar_select %p1426_p6, 1, 0 }
   0xe   : > { %p1431_p8 = pnand %p889_p5, %p208_p7  ;;  %s220_s11 = sshll.u32 %s1342_s10, 4  ;;  %s1435_s11 = int_to_ptr.vmem [resolvable:$true] %s220_s11 }
   0xf   : > { %1690 = sst [smem:[#allocation15_spill]] %s1689_s8  ;;  %s1343_s13 = smov [#allocation7]  }
  0x10   : > { %s1691_s9 = scalar_select %p1431_p8, 1, 0 }
  0x11   : > { %p1045_p9 = pneg %p1431_p8  ;;  %s236_s14 = sshll.u32 %s1343_s13, 4  ;;  %s1446_s14 = int_to_ptr.vmem [resolvable:$true] %s236_s14 }
  0x12   : > { %s1344_s15 = smov [#allocation8]   ;;  %s1152_s19 = scalar_lea.hbm %s1677_s1, 1024 }
  0x13   : > { %p1442_p11 = pnand %p1045_p9, %p1684_p1  ;;  %s1448_s16 = sshll.u32 %s1344_s15, 4  ;;  %s253_s16 = int_to_ptr.vmem [resolvable:$true] %s1448_s16 }
  0x14   : > { %p1153_p12 = scmp.ne.s32.totalorder %s1677_s1, %s1152_s19  ;;  %p1159_p5 = scmp.lt.u32.totalorder %s1152_s19, %s1677_s1 }
  0x15   : > { %p1458_p13 = pneg %p1442_p11 }
  0x17   : > { %p1155_p0 = pnand %p1458_p13, %p1153_p12 }
  0x19   : > { %p1156_p3 = pneg %p1155_p0 }
  0x1b   : > { %p1161_p7 = pnand %p1159_p5, %p1156_p3 }
  0x1d   : > { %1164 = shalt.err (!%p1161_p7)
}
  0x1e   : > { %s1165_s10 = scalar_lea.vmem %s1435_s11, 1024  ;;  %p1173_p2 = scmp.lt.s32.totalorder %s1435_s11, %s1435_s11 }
  0x1f   : > { %p1166_p9 = scmp.ne.s32.totalorder %s1435_s11, %s1165_s10  ;;  %p1174_p6 = scmp.lt.s32.totalorder %s1165_s10, %s1165_s10 }
  0x21   : > { %p1168_p10 = pnand %p1166_p9, %p1458_p13  ;;  %p1175_p12 = por %p1174_p6, %p1173_p2 }
  0x23   : > { %p1169_p1 = pneg %p1168_p10 }
  0x25   : > { %p1176_p0 = pnand %p1175_p12, %p1169_p1 }
  0x27   : > { %1179 = shalt.err (!%p1176_p0)
}
  0x28   : > { %s1345_s13 = smov 64   ;;  %s1346_s15 = smov 4  }
  0x29   : > { %1048 = dma.hbm_to_vmem [thread:$0]  (!%p1442_p11), %s1677_s1, 1024, %s1435_s11, [#allocation6], %s1345_s13, %s1345_s13, %s1346_s15  }
  0x2a   : > { %s1180_s21 = scalar_lea.hbm %s1679_s3, 1024 }
  0x2b   : > { %p1181_p1 = scmp.ne.s32.totalorder %s1679_s3, %s1180_s21  ;;  %p1187_p10 = scmp.lt.u32.totalorder %s1180_s21, %s1679_s3 }
  0x2d   : > { %p1183_p2 = pnand %p1181_p1, %p1458_p13 }
  0x2f   : > { %p1184_p6 = pneg %p1183_p2 }
  0x31   : > { %p1189_p3 = pnand %p1187_p10, %p1184_p6 }
  0x33   : > { %1192 = shalt.err (!%p1189_p3)
}
  0x34   : > { %s1193_s11 = scalar_lea.vmem %s1446_s14, 1024  ;;  %p1201_p12 = scmp.lt.s32.totalorder %s1446_s14, %s1446_s14 }
  0x35   : > { %p1194_p5 = scmp.ne.s32.totalorder %s1446_s14, %s1193_s11  ;;  %p1202_p0 = scmp.lt.s32.totalorder %s1193_s11, %s1193_s11 }
  0x37   : > { %p1196_p7 = pnand %p1194_p5, %p1458_p13  ;;  %p1203_p1 = por %p1202_p0, %p1201_p12 }
  0x39   : > { %p1197_p9 = pneg %p1196_p7 }
  0x3b   : > { %p1204_p2 = pnand %p1203_p1, %p1197_p9 }
  0x3d   : > { %1207 = shalt.err (!%p1204_p2)
}
  0x3e   : > { %1051 = dma.hbm_to_vmem [thread:$0]  (!%p1442_p11), %s1679_s3, 1024, %s1446_s14, [#allocation6], %s1345_s13, %s1345_s13, %s1346_s15  }
  0x3f   : > { %s1208_s20 = scalar_lea.hbm %s1681_s5, 1024 }
  0x40   : > { %p1209_p6 = scmp.ne.s32.totalorder %s1681_s5, %s1208_s20  ;;  %p1215_p5 = scmp.lt.u32.totalorder %s1208_s20, %s1681_s5 }
  0x42   : > { %p1211_p10 = pnand %p1209_p6, %p1458_p13 }
  0x44   : > { %p1212_p3 = pneg %p1211_p10 }
  0x46   : > { %p1217_p7 = pnand %p1215_p5, %p1212_p3 }
  0x48   : > { %1220 = shalt.err (!%p1217_p7)
}
  0x49   : > { %s1221_s11 = scalar_lea.vmem %s253_s16, 1024  ;;  %p1229_p1 = scmp.lt.s32.totalorder %s253_s16, %s253_s16 }
  0x4a   : > { %p1222_p9 = scmp.ne.s32.totalorder %s253_s16, %s1221_s11  ;;  %p1230_p2 = scmp.lt.s32.totalorder %s1221_s11, %s1221_s11 }
  0x4c   : > { %p1224_p12 = pnand %p1222_p9, %p1458_p13  ;;  %p1231_p4 = por %p1230_p2, %p1229_p1 }
  0x4e   : > { %p1225_p0 = pneg %p1224_p12 }
  0x50   : > { %p1232_p8 = pnand %p1231_p4, %p1225_p0 }
  0x52   : > { %1235 = shalt.err (!%p1232_p8)
}
  0x53   : > { %1054 = dma.hbm_to_vmem [thread:$0]  (!%p1442_p11), %s1681_s5, 1024, %s253_s16, [#allocation9], %s1345_s13, %s1345_s13, %s1346_s15  }
  0x54   : > { %s1531_s22 = sadd.s32 1, %s1340_s27   ;;  %s32_s17 = sadd.s32 1, %s1336_s26 }
  0x55   : > { %s29_s12 = ssub.s32 %s1340_s27, %s1531_s22  ;;  %p39_p8 = scmp.ne.s32.totalorder %s1336_s26, %s1332_s25 }
  0x56   : > { %p30_p4 = scmp.eq.s32.totalorder %s29_s12, 0  ;;  %p40_p13 = scmp.eq.s32.totalorder %s1340_s27, 0 }
  0x57   : > { %p1066_p6 = scmp.lt.s32.totalorder %s1340_s27, 2  ;;  %p1694_p3 = scmp.eq.s32.totalorder %s1412_s28, 1 }
  0x58   : > { %s1541_s18 = scalar_select %p30_p4, %s1336_s26, %s32_s17  }
  0x59   : > { %p41_p10 = por %p40_p13, %p39_p8  ;;  %p1545_p5 = por %p1694_p3, %p39_p8 }
  0x5a   : > { %s269_s20 = sand.u32 1, %s1336_s26   ;;  %s937_s21 = sshll.u32 %s1340_s27, 8 }
  0x5b   : > { %s894_s16 = sshll.u32 %s269_s20, 4  ;;  %s1554_s10 = scalar_lea.hbm %s1676_s0, %s937_s21 }
  0x5c   : > { %s273_s11 = scalar_lea.vmem [#allocation2], %s894_s16  ;;  %p1556_p11 = pnand %p1066_p6, %p41_p10 }
  0x5d   : > { %s280_s14 = sshll.u32 %s273_s11, 4  ;;  %s1562_s12 = scalar_lea.sflag [#allocation3], %s269_s20  ;;  %s1560_s14 = int_to_ptr.vmem [resolvable:$true] %s280_s14 }
  0x5e   : > { %s1236_s17 = scalar_lea.hbm %s1554_s10, 256  ;;  %p1238_p9 = pneg %p1556_p11 }
  0x5f   : > { %p1237_p7 = scmp.ne.s32.totalorder %s1554_s10, %s1236_s17  ;;  %s1241_s23 = scalar_lea.hbm %s1676_s0, 512 }
  0x60   : > { %p1242_p1 = scmp.lt.u32.totalorder %s1554_s10, %s1676_s0  ;;  %p1243_p2 = scmp.lt.u32.totalorder %s1241_s23, %s1236_s17 }
  0x61   : > { %p1239_p12 = pnand %p1238_p9, %p1237_p7  ;;  %p1245_p8 = scmp.lt.u32.totalorder %s1236_s17, %s1554_s10 }
  0x62   : > { %p1244_p4 = por %p1243_p2, %p1242_p1 }
  0x63   : > { %p1240_p0 = pneg %p1239_p12 }
  0x64   : > { %p1246_p13 = por %p1245_p8, %p1244_p4 }
  0x66   : > { %p1247_p6 = pnand %p1246_p13, %p1240_p0 }
  0x68   : > { %1250 = shalt.err (!%p1247_p6)
}
  0x69   : > { %s1251_s20 = scalar_lea.vmem %s1560_s14, 256  ;;  %s1347_s21 = smov [#allocation2]  }
  0x6a   : > { %p1252_p10 = scmp.ne.s32.totalorder %s1560_s14, %s1251_s20  ;;  %s1256_s16 = sshll.u32 %s1347_s21, 4  ;;  %s1257_s16 = int_to_ptr.vmem [resolvable:$false] %s1256_s16 }
  0x6b   : > { %s1258_s29 = scalar_lea.vmem %s1257_s16, 512  ;;  %p1259_p12 = scmp.lt.s32.totalorder %s1560_s14, %s1257_s16 }
  0x6c   : > { %p1254_p3 = pnand %p1252_p10, %p1238_p9  ;;  %p1260_p1 = scmp.lt.s32.totalorder %s1258_s29, %s1251_s20 }
  0x6e   : > { %p1255_p7 = pneg %p1254_p3  ;;  %p1261_p2 = por %p1260_p1, %p1259_p12 }
  0x70   : > { %p1262_p4 = pnand %p1261_p2, %p1255_p7 }
  0x72   : > { %1265 = shalt.err (!%p1262_p4)
}
  0x73   : > { %1058 = dma.hbm_to_vmem [thread:$0]  (!%p1556_p11), %s1554_s10, 256, %s1560_s14, %s1562_s12, %s1345_s13, %s1345_s13, %s1346_s15  }
  0x74   : > { %p1697_p9 = scmp.ne.s32.totalorder %s1691_s9, 0 }
  0x75   : > { %s1596_s17 = sand.u32 (!%p1697_p9), 1, %s1332_s25   ;;  %p1698_p0 = scmp.ne.s32.totalorder (!%p1697_p9), %s1688_s30, 0 }
  0x76   : > { %292 = sbr.rel (%p1697_p9) target bundleno = 1160 (0x488), region = 48  ;;  %s898_s23 = sshll.u32 (!%p1697_p9), %s1596_s17, 4 }
  0x77   : > { %s295_s11 = scalar_lea.sflag (!%p1697_p9), [#allocation3], %s1596_s17  ;;  %s1600_s20 = scalar_lea.vmem (!%p1697_p9), [#allocation2], %s898_s23 }
  0x7d   : > { %1311 = dma.done.wait (%p1698_p0), %s295_s11, 256  }
  0x7e   : > { %1313 = vsyncadd (%p1698_p0), %s295_s11, 4294967040  ;;  %p1699_p11 = scmp.eq.s32.totalorder %s1412_s28, 0 }
  0x80   : > { %1315 = dma.done.wait (%p1699_p11), [#allocation6], 2048   ;;  %p1700_p8 = pmov %p1699_p11 }
  0x82   : > { %1317 = vsyncadd (%p1700_p8), [#allocation6], 4294965248  ;;  %p1701_p13 = pmov %p1700_p8 }
  0x83   : > { %p1702_p6 = pmov %p1700_p8 }
  0x84   : > { %1319 = dma.done.wait (%p1701_p13), [#allocation9], 1024  }
  0x85   : > { %1321 = vsyncadd (%p1702_p6), [#allocation9], 4294966272  ;;  %v1110_v0 = vld [vmem:[#allocation5] sm:$0xff]   ;;  %v1111_v1 = vld [vmem:[#allocation5 + $0x8] sm:$0xff]   ;;  %s902_s8 = sshll.u32 %s1596_s17, 5  ;;  %s938_s21 = sshll.u32 %s1412_s28, 9 }
  0x86   : > { %969 = vmatprep.subr.bf16.mxu0 %v1110_v0  ;;  %v1112_v2 = vld [vmem:[#allocation5 + $0x10] sm:$0xff]   ;;  %v1113_v3 = vld [vmem:[#allocation5 + $0x18] sm:$0xff]   ;;  %v1120_v5 = vld [vmem:[#allocation7] sm:$0xff]   ;;  %s340_s12 = scalar_lea.vmem [#allocation10], %s902_s8  ;;  %s1630_s11 = scalar_lea.hbm %s1683_s7, %s938_s21 }
  0x87   : > { %970 = vmatpush3.bf16.msra.mxu0 %v1110_v0  ;;  %v1118_v4 = vld [vmem:[%s1600_s20] sm:$0xff]   ;;  %v1121_v6 = vld [vmem:[#allocation7 + $0x8] sm:$0xff]   ;;  %989 = vmatprep.subr.bf16.mxu1 %v1120_v5  ;;  %v1123_v10 = vld [vmem:[#allocation7 + $0x18] sm:$0xff]   ;;  %s786_s16 = sshll.u32 %s340_s12, 4  ;;  %s1348_s28 = smov [#allocation10]   ;;  %s1632_s16 = int_to_ptr.vmem [resolvable:$true] %s786_s16 }
  0x88   : > { %971 = vmatprep.subr.bf16.mxu0 %v1111_v1  ;;  %985 = vmatprep.mubr.bf16.mxu0 %v1118_v4  ;;  %v1114_v7 = vld [vmem:[#allocation5 + $0x20] sm:$0xff]   ;;  %v1122_v8 = vld [vmem:[#allocation7 + $0x10] sm:$0xff]   ;;  %v1115_v9 = vld [vmem:[#allocation5 + $0x28] sm:$0xff]   ;;  %s1266_s30 = scalar_lea.vmem %s1632_s16, 512  ;;  %s1270_s9 = sshll.u32 %s1348_s28, 4  ;;  %s1271_s9 = int_to_ptr.vmem [resolvable:$false] %s1270_s9 }
  0x89   : > { %990 = vmatpush3.bf16.msra.mxu1 %v1120_v5  ;;  %v1116_v11 = vld [vmem:[#allocation5 + $0x30] sm:$0xff]   ;;  %v1124_v12 = vld [vmem:[#allocation7 + $0x20] sm:$0xff]   ;;  %v1117_v13 = vld [vmem:[#allocation5 + $0x38] sm:$0xff]   ;;  %p1267_p10 = scmp.ne.s32.totalorder %s1632_s16, %s1266_s30  ;;  %s1272_s13 = scalar_lea.vmem %s1271_s9, 1024 }
  0x8a   : > { %991 = vmatprep.subr.bf16.mxu1 %v1121_v6  ;;  %v1125_v14 = vld [vmem:[#allocation7 + $0x28] sm:$0xff]   ;;  %v1126_v16 = vld [vmem:[#allocation7 + $0x30] sm:$0xff]   ;;  %v1127_v17 = vld [vmem:[#allocation7 + $0x38] sm:$0xff]   ;;  %p1273_p12 = scmp.lt.s32.totalorder %s1632_s16, %s1271_s9  ;;  %p1274_p1 = scmp.lt.s32.totalorder %s1272_s13, %s1266_s30 }
  0x8b   : > { %972 = vmatpush3.bf16.msra.mxu0 %v1111_v1  ;;  %v1119_v15 = vld [vmem:[%s1600_s20 + $0x8] sm:$0xff]   ;;  %v1128_v18 = vld [vmem:[#allocation8] sm:$0xff]   ;;  %v1130_v20 = vld [vmem:[#allocation8 + $0x10] sm:$0xff]   ;;  %s773_s20 = scalar_lea.sflag [#allocation4], %s1596_s17  ;;  %p1268_p3 = pnand %p1267_p10, %p1545_p5 }
  0x8c   : > { %973 = vmatprep.subr.bf16.mxu0 %v1112_v2  ;;  %v1129_v19 = vld [vmem:[#allocation8 + $0x8] sm:$0xff]   ;;  %v1131_v21 = vld [vmem:[#allocation8 + $0x18] sm:$0xff]   ;;  %v1132_v22 = vld [vmem:[#allocation8 + $0x20] sm:$0xff]   ;;  %p1275_p2 = por %p1274_p1, %p1273_p12 }
  0x8d   : > { %992 = vmatpush3.bf16.msra.mxu1 %v1121_v6  ;;  %v1133_v23 = vld [vmem:[#allocation8 + $0x28] sm:$0xff]   ;;  %v903_v24 = vld [vmem:[%s1678_s2] ss:$0 sm:$0xff]  ;;  %v1134_v39 = vld [vmem:[#allocation8 + $0x30] sm:$0xff]   ;;  %p1269_p7 = pneg %p1268_p3 }
  0x8e   : > { %993 = vmatprep.subr.bf16.mxu1 %v1122_v8  ;;  %v1135_v40 = vld [vmem:[#allocation8 + $0x38] sm:$0xff]   ;;  %v914_v41 = vld [vmem:[%s1680_s4] ss:$0 sm:$0xff] }
  0x8f   : > { %974 = vmatpush3.bf16.msra.mxu0 %v1112_v2  ;;  %v923_v56 = vld [vmem:[%s1682_s6] ss:$0 sm:$0xff]  ;;  %p1276_p4 = pnand %p1275_p2, %p1269_p7 }
  0x90   : > { %975 = vmatprep.subr.bf16.mxu0 %v1113_v3 }
  0x91   : > { %994 = vmatpush3.bf16.msra.mxu1 %v1122_v8 }
  0x92   : > { %995 = vmatprep.subr.bf16.mxu1 %v1123_v10 }
  0x93   : > { %976 = vmatpush3.bf16.msra.mxu0 %v1113_v3 }
  0x94   : > { %977 = vmatprep.subr.bf16.mxu0 %v1114_v7 }
  0x95   : > { %996 = vmatpush3.bf16.msra.mxu1 %v1123_v10 }
  0x96   : > { %997 = vmatprep.subr.bf16.mxu1 %v1124_v12 }
  0x97   : > { %978 = vmatpush3.bf16.msra.mxu0 %v1114_v7 }
  0x98   : > { %979 = vmatprep.subr.bf16.mxu0 %v1115_v9 }
  0x99   : > { %998 = vmatpush3.bf16.msra.mxu1 %v1124_v12 }
  0x9a   : > { %999 = vmatprep.subr.bf16.mxu1 %v1125_v14 }
  0x9b   : > { %980 = vmatpush3.bf16.msra.mxu0 %v1115_v9 }
  0x9c   : > { %981 = vmatprep.subr.bf16.mxu0 %v1116_v11 }
  0x9d   : > { %1000 = vmatpush3.bf16.msra.mxu1 %v1125_v14 }
  0x9e   : > { %1001 = vmatprep.subr.bf16.mxu1 %v1126_v16 }
  0x9f   : > { %982 = vmatpush3.bf16.msra.mxu0 %v1116_v11 }
  0xa0   : > { %983 = vmatprep.subr.bf16.mxu0 %v1117_v13 }
  0xa1   : > { %1002 = vmatpush3.bf16.msra.mxu1 %v1126_v16 }
  0xa2   : > { %1003 = vmatprep.subr.bf16.mxu1 %v1127_v17 }
  0xa3   : > { %984 = vmatpush3.bf16.msra.mxu0 %v1117_v13 }
  0xa4   : > { %1009 = vmatprep.subr.bf16.mxu0 %v1128_v18 }
  0xa5   : > { %1004 = vmatpush3.bf16.msra.mxu1 %v1127_v17 }
  0xa6   : > { %986 = vmatmul.mubr.bf16.vlgmr.msra.gmra.mrb[0].mxu0 %v1119_v15 }
  0xa7   : > { %1010 = vmatpush3.bf16.msra.mxu0 %v1128_v18 }
  0xa8   : > { %1011 = vmatprep.subr.bf16.mxu0 %v1129_v19 }
  0xab   : > { %1012 = vmatpush3.bf16.msra.mxu0 %v1129_v19 }
  0xac   : > { %1013 = vmatprep.subr.bf16.mxu0 %v1130_v20 }
  0xaf   : > { %1014 = vmatpush3.bf16.msra.mxu0 %v1130_v20 }
  0xb0   : > { %1015 = vmatprep.subr.bf16.mxu0 %v1131_v21 }
  0xb3   : > { %1016 = vmatpush3.bf16.msra.mxu0 %v1131_v21 }
  0xb4   : > { %1017 = vmatprep.subr.bf16.mxu0 %v1132_v22 }
  0xb7   : > { %1018 = vmatpush3.bf16.msra.mxu0 %v1132_v22 }
  0xb8   : > { %1019 = vmatprep.subr.bf16.mxu0 %v1133_v23 }
  0xbb   : > { %1020 = vmatpush3.bf16.msra.mxu0 %v1133_v23 }
  0xbc   : > { %1021 = vmatprep.subr.bf16.mxu0 %v1134_v39 }
  0xbf   : > { %1022 = vmatpush3.bf16.msra.mxu0 %v1134_v39 }
  0xc0   : > { %1023 = vmatprep.subr.bf16.mxu0 %v1135_v40 }
  0xc3   : > { %1024 = vmatpush3.bf16.msra.mxu0 %v1135_v40 }
 0x179   : > { %v987_v25 = vpop.f32.mrb[0].mxu0 }
 0x17a   : > { %v474_v26 = vadd.f32 %v987_v25, %v903_v24  ;;  %v465_v27 = vpop.f32.mrb[1].mxu0 }
 0x17b   : > { %v466_v28 = vadd.f32 %v903_v24, %v465_v27  ;;  %v988_v29 = vpop.f32.mrb[2].mxu0 }
 0x17c   : > { %v477_v30 = vadd.f32 %v988_v29, %v903_v24  ;;  %v468_v31 = vpop.f32.mrb[3].mxu0  ;;  %v482_v33 = vmax.f32 %v474_v26, 0.0 }
 0x17d   : > { %v469_v32 = vadd.f32 %v903_v24, %v468_v31  ;;  %v480_v35 = vmax.f32 %v466_v28, 0.0 }
 0x17e   : > { %v483_v34 = vmax.f32 %v477_v30, 0.0 }
 0x17f   : > { %v481_v36 = vmax.f32 %v469_v32, 0.0 }
 0x180   : > { %v485_v37 = vpack.c.bf16 %v483_v34, %v482_v33 }
 0x181   : > { %v484_v38 = vpack.c.bf16 %v481_v36, %v480_v35 }
 0x183   : > { %1005 = vmatprep.mubr.bf16.mxu1 %v484_v38 }
 0x184   : > { %1006 = vmatmul.mubr.bf16.vlgmr.msra.gmra.mrb[0].mxu1 %v485_v37 }
 0x257   : > { %v1007_v42 = vpop.f32.mrb[0].mxu1 }
 0x258   : > { %v600_v43 = vadd.f32 %v1007_v42, %v914_v41  ;;  %v591_v44 = vpop.f32.mrb[1].mxu1 }
 0x259   : > { %v592_v45 = vadd.f32 %v914_v41, %v591_v44  ;;  %v1008_v46 = vpop.f32.mrb[2].mxu1 }
 0x25a   : > { %v603_v47 = vadd.f32 %v1008_v46, %v914_v41  ;;  %v594_v48 = vpop.f32.mrb[3].mxu1  ;;  %v608_v50 = vmax.f32 %v600_v43, 0.0 }
 0x25b   : > { %v595_v49 = vadd.f32 %v914_v41, %v594_v48  ;;  %v606_v52 = vmax.f32 %v592_v45, 0.0 }
 0x25c   : > { %v609_v51 = vmax.f32 %v603_v47, 0.0 }
 0x25d   : > { %v607_v53 = vmax.f32 %v595_v49, 0.0 }
 0x25e   : > { %v611_v54 = vpack.c.bf16 %v609_v51, %v608_v50 }
 0x25f   : > { %v610_v55 = vpack.c.bf16 %v607_v53, %v606_v52 }
 0x261   : > { %1025 = vmatprep.mubr.bf16.mxu0 %v610_v55 }
 0x262   : > { %1026 = vmatmul.mubr.bf16.vlgmr.msra.gmra.mrb[4].mxu0 %v611_v54 }
 0x335   : > { %v1027_v57 = vpop.f32.mrb[4].mxu0 }
 0x336   : > { %v726_v58 = vadd.f32 %v1027_v57, %v923_v56  ;;  %v717_v59 = vpop.f32.mrb[5].mxu0 }
 0x337   : > { %v718_v60 = vadd.f32 %v923_v56, %v717_v59  ;;  %v1028_v61 = vpop.f32.mrb[6].mxu0 }
 0x338   : > { %736 = vmax.xlane.f32.xlu1 %v726_v58  ;;  %v720_v62 = vpop.f32.mrb[7].mxu0  ;;  %v729_v63 = vadd.f32 %v1028_v61, %v923_v56 }
 0x339   : > { %732 = vmax.xlane.f32.xlu0 %v718_v60  ;;  %v721_v0 = vadd.f32 %v923_v56, %v720_v62 }
 0x33c   : > { %738 = vmax.xlane.f32.xlu1 %v729_v63 }
 0x33d   : > { %734 = vmax.xlane.f32.xlu0 %v721_v0 }
 0x3c5   : > { %v737_v1 = vpop.xlane.xlu1 %736 }
 0x3c6   : > { %v742_v2 = vsub.f32 %v726_v58, %v737_v1  ;;  %v733_v3 = vpop.xlane.xlu0 %732 }
 0x3c7   : > { %v740_v4 = vsub.f32 %v718_v60, %v733_v3 }
 0x3c8   : > { %v748_v7 = vmul.f32 1.442695, %v742_v2 }
 0x3c9   : > { %v744_v5 = vmul.f32 1.442695, %v740_v4  ;;  %v739_v6 = vpop.xlane.xlu1 %738 }
 0x3ca   : > { %v735_v8 = vpop.xlane.xlu0 %734  ;;  %v743_v9 = vsub.f32 %v729_v63, %v739_v6 }
 0x3cb   : > { %1136 = vpow2.f32 %v744_v5  ;;  %v741_v10 = vsub.f32 %v721_v0, %v735_v8 }
 0x3cc   : > { %1138 = vpow2.f32 %v748_v7  ;;  %v750_v12 = vmul.f32 1.442695, %v743_v9 }
 0x3cd   : > { %v746_v11 = vmul.f32 1.442695, %v741_v10 }
 0x3cf   : > { %1140 = vpow2.f32 %v746_v11 }
 0x3d0   : > { %1142 = vpow2.f32 %v750_v12 }
 0x3d5   : > { %v1137_v13 = vpop.eup %1136 }
 0x3d6   : > { %752 = vadd.xlane.f32.xlu0 %v1137_v13  ;;  %v1139_v14 = vpop.eup %1138 }
 0x3d9   : > { %v1141_v15 = vpop.eup %1140 }
 0x3da   : > { %756 = vadd.xlane.f32.xlu0 %v1139_v14  ;;  %754 = vadd.xlane.f32.xlu1 %v1141_v15  ;;  %v1143_v16 = vpop.eup %1142 }
 0x3de   : > { %758 = vadd.xlane.f32.xlu1 %v1143_v16 }
 0x463   : > { %v753_v17 = vpop.xlane.xlu0 %752 }
 0x464   : > { %1144 = vrcp.f32 %v753_v17 }
 0x467   : > { %v755_v18 = vpop.xlane.xlu1 %754  ;;  %v757_v19 = vpop.xlane.xlu0 %756 }
 0x468   : > { %1146 = vrcp.f32 %v755_v18 }
 0x469   : > { %1148 = vrcp.f32 %v757_v19 }
 0x46b   : > { %v759_v20 = vpop.xlane.xlu1 %758 }
 0x46c   : > { %1150 = vrcp.f32 %v759_v20 }
 0x46e   : > { %v1145_v21 = vpop.eup %1144 }
 0x46f   : > { %v761_v22 = vmul.f32 %v1145_v21, %v1137_v13 }
 0x471   : > { %768 = vst [vmem:[%s340_s12] sm:$0xff] %v761_v22 }
 0x472   : > { %v1147_v23 = vpop.eup %1146 }
 0x473   : > { %v1149_v24 = vpop.eup %1148  ;;  %v763_v25 = vmul.f32 %v1147_v23, %v1141_v15 }
 0x474   : > { %v765_v26 = vmul.f32 %v1149_v24, %v1139_v14 }
 0x475   : > { %769 = vst [vmem:[%s340_s12 + $0x8] sm:$0xff] %v763_v25 }
 0x476   : > { %v1151_v27 = vpop.eup %1150  ;;  %770 = vst [vmem:[%s340_s12 + $0x10] sm:$0xff] %v765_v26 }
 0x477   : > { %v767_v28 = vmul.f32 %v1151_v27, %v1143_v16 }
 0x479   : > { %771 = vst [vmem:[%s340_s12 + $0x18] sm:$0xff] %v767_v28 }
 0x47a   : > { %1279 = shalt.err (!%p1276_p4)
}
 0x47b   : > { %s1280_s15 = scalar_lea.hbm %s1630_s11, 512  ;;  %s1284_s8 = scalar_lea.hbm %s1683_s7, 1024 }
 0x47c   : > { %p1281_p9 = scmp.ne.s32.totalorder %s1630_s11, %s1280_s15  ;;  %p1285_p8 = scmp.lt.u32.totalorder %s1630_s11, %s1683_s7 }
 0x47d   : > { %p1286_p13 = scmp.lt.u32.totalorder %s1284_s8, %s1280_s15  ;;  %p1288_p10 = scmp.lt.u32.totalorder %s1280_s15, %s1630_s11 }
 0x47e   : > { %p1282_p0 = pnand %p1281_p9, %p1545_p5 }
 0x47f   : > { %p1287_p6 = por %p1286_p13, %p1285_p8 }
 0x480   : > { %p1283_p11 = pneg %p1282_p0 }
 0x481   : > { %p1289_p3 = por %p1288_p10, %p1287_p6 }
 0x483   : > { %p1290_p7 = pnand %p1289_p3, %p1283_p11 }
 0x485   : > { %1293 = shalt.err (!%p1290_p7)
}
 0x486   : > { %s1349_s29 = smov 128   ;;  %s1350_s23 = smov 8  }
 0x487   : > { %1043 = dma.vmem_to_hbm [thread:$0]  (%p1545_p5), %s1632_s16, 512, %s1630_s11, %s773_s20, %s1349_s29, %s1349_s29, %s1350_s23  }
 0x488 PF: > { %s1703_s30 = sld [smem:[#allocation15_spill]]  ;;  %s801_s28 = sand.u32 1, %s1328_s24  }
 0x489   : > { %p1705_p1 = scmp.ge.s32.totalorder %s1340_s27, 2  ;;  %s802_s9 = scalar_lea.sflag [#allocation4], %s801_s28 }
 0x48e   : > { %p1704_p12 = scmp.ne.s32.totalorder %s1703_s30, 0 }
 0x490   : > { %p1060_p2 = pnand %p1705_p1, %p1704_p12 }
 0x492   : > { %1323 = dma.done.wait (!%p1060_p2), %s802_s9, 512  }
 0x493   : > { %1325 = vsyncadd (!%p1060_p2), %s802_s9, 4294966784  ;;  %p22_p4 = scmp.ge.s32.totalorder %s1531_s22, 4   ;;  %s1706_s24 = smov %s1332_s25 }
 0x494   : > { %s1707_s25 = smov %s1336_s26  ;;  %s1708_s26 = smov %s1541_s18 }
 0x495   : > { %s1709_s27 = smov %s1531_s22  ;;  %24 = sbr.rel (!%p22_p4) target bundleno = 7 (0x7), region = 105 }
 0x49c   :  { %807 = vsyncpa [#allocation3], 1 }
 0x49d   :  { %809 = vsyncpa [#allocation3 + $0x1], 1 }
 0x49e   :  { %810 = vsyncpa [#allocation6], 1 }
 0x49f   :  { %811 = vsyncpa [#allocation9], 1 }
 0x4a0   :  { %812 = vsyncpa [#allocation4], 1 }
 0x4a1   :  { %814 = vsyncpa [#allocation4 + $0x1], 1 }

</bundles_post_ra>
